<compile_context>
chip_gen: v6e
topology: v6e:2x2x1
jax: 0.10.0
libtpu: 0.0.40
codegen_flags: <defaults>
</compile_context>

<pallas_src>
from functools import lru_cache, partial

import numpy as np
import jax
import jax.numpy as jnp
from jax.experimental import pallas as pl
from jax.experimental.pallas import tpu as pltpu

# ---------------- ANTLoss hyper-parameters (defaults from __init__) ----------------
GRID_SIZE = (9, 9)
LAMBDA_DELTA = 1.0
LAMBDA_SPECKLE = 0.7
LAMBDA_GAMMA = 0.3
MAX_DECREASE_RES = 0.25
ALPHA = 0.001
CROP = (1, 1)          # default crop == identity (no cropping path taken)
LABEL_THRESHOLD = 0.1


# ============================ generation-aware VMEM budget ============================

@lru_cache(maxsize=None)
def _vmem_budget_bytes():
    """~60% of physical VMEM (v5e/v6e: 128 MiB, v7x: 64 MiB), capped for safety."""
    try:
        cap = int(pltpu.get_tpu_info().vmem_capacity_bytes)
    except Exception:
        cap = 64 * 1024 * 1024          # conservative (v7x) fallback
    return min(int(cap * 0.6), 96 * 1024 * 1024)


def _pad128(n):
    return ((n + 127) // 128) * 128


def _pick_rot_tile(n_pad, m_rows, c, cy, budget):
    """Square (tk==tn) tile for the rotation matmul; counts every double-buffered
    block (lhs, rot operand, both outputs) plus the f32 accumulator."""
    for t in (2048, 1024, 512, 384, 256, 128):
        if n_pad % t:
            continue
        need = 4 * (2 * m_rows * t      # lhs block   (x2 buffers)
                    + 2 * t * t         # rot block   (x2 buffers)
                    + 2 * c * t         # adv out     (x2 buffers)
                    + 2 * cy * t        # label out   (x2 buffers)
                    + m_rows * t)       # accumulator scratch
        if need <= int(budget * 0.7):
            return t
    return 128                          # n_pad is always a multiple of 128


# ================================ Pallas kernels ================================

def _noise_resample_kernel(x_ref, bg_ref, sp_ref, dl_ref, gm_ref,
                           rh_ref, rwt_ref, out_ref, *, w_first):
    # Fused noise model + (bilinear-to-label-size ∘ rand-decrease-res) resample for
    # one (batch, channel) block.  Elementwise math in f32 (one log + one exp per
    # pixel), matmuls in bf16 with f32 accumulation on the MXU.
    x = x_ref[0, 0].astype(jnp.float32)           # (H, W)
    bg = bg_ref[0, 0].astype(jnp.float32)
    sp = sp_ref[0, 0]
    dl = dl_ref[0, 0]
    gm = gm_ref[0, 0]
    base = jnp.clip((x + ALPHA * bg) * sp + dl, 0.0, 1.0)
    powed = jnp.exp(gm * jnp.log(jnp.maximum(base, 1e-30)))
    adv = jnp.where(base > 0.0, powed, 0.0).astype(jnp.bfloat16)   # pow(0, g) == 0

    rh = rh_ref[0]                                 # (Hy, H)  bf16, per-batch
    rwt = rwt_ref[0]                               # (W, Wy)  bf16, per-batch
    if w_first:                                    # smaller intermediate chosen at trace time
        t = jnp.dot(adv, rwt, preferred_element_type=jnp.float32)            # (H, Wy)
        o = jnp.dot(rh, t.astype(jnp.bfloat16), preferred_element_type=jnp.float32)
    else:
        t = jnp.dot(rh, adv, preferred_element_type=jnp.float32)             # (Hy, W)
        o = jnp.dot(t.astype(jnp.bfloat16), rwt, preferred_element_type=jnp.float32)
    out_ref[0, 0] = o.astype(out_ref.dtype)        # (Hy, Wy)


def _rotate_threshold_kernel(lhs_ref, rot_ref, adv_out_ref, lab_out_ref, acc_ref,
                             *, C, Cy):
    # Concatenated (C+Cy, tk) LHS against one shared (tk, tn) rotation tile; K-tiled
    # f32 accumulator; adv store + label threshold fused into the k==last epilogue.
    # Entire path kept in f32 so the 0.1 label threshold is bit-stable.
    k = pl.program_id(2)

    @pl.when(k == 0)
    def _():
        acc_ref[...] = jnp.zeros_like(acc_ref)

    acc_ref[...] += jnp.dot(lhs_ref[0], rot_ref[0],
                            preferred_element_type=jnp.float32)

    @pl.when(k == pl.num_programs(2) - 1)
    def _():
        acc = acc_ref[...]
        adv_out_ref[0] = acc[:C, :].astype(adv_out_ref.dtype)
        lab = acc[C:C + Cy, :]
        lab_out_ref[0] = jnp.where(lab >= LABEL_THRESHOLD, 1.0, 0.0).astype(lab_out_ref.dtype)


# ================================ Pallas wrappers ================================

def pallas_noise_resample(x, background, speckle, delta, gamma, rh, rwt):
    """x/background (B,C,H,W) f32; fields (1,C,H,W) f32; rh (B,Hy,H) bf16;
    rwt (B,W,Wy) bf16 -> (B,C,Hy,Wy) f32."""
    B, C, H, W = x.shape
    Hy = rh.shape[1]
    Wy = rwt.shape[2]
    w_first = (H * Wy) <= (Hy * W)                 # pick the smaller intermediate
    img_spec = pl.BlockSpec((1, 1, H, W), lambda b, c: (b, c, 0, 0))
    fld_spec = pl.BlockSpec((1, 1, H, W), lambda b, c: (0, c, 0, 0))
    return pl.pallas_call(
        partial(_noise_resample_kernel, w_first=w_first),
        out_shape=jax.ShapeDtypeStruct((B, C, Hy, Wy), jnp.float32),
        grid=(B, C),                               # C innermost: rh/rwt stay resident across C
        in_specs=[img_spec, img_spec, fld_spec, fld_spec, fld_spec,
                  pl.BlockSpec((1, Hy, H), lambda b, c: (b, 0, 0)),
                  pl.BlockSpec((1, W, Wy), lambda b, c: (b, 0, 0))],
        out_specs=pl.BlockSpec((1, 1, Hy, Wy), lambda b, c: (b, c, 0, 0)),
        compiler_params=pltpu.CompilerParams(
            dimension_semantics=("parallel", "parallel"),
            vmem_limit_bytes=_vmem_budget_bytes()),
    )(x, background, speckle, delta, gamma, rh, rwt)


def pallas_rotate_threshold(lhs, rot_t, C, Cy):
    """lhs (B, M_pad, n_pad) f32 (adv rows then y rows then zero-pad rows);
    rot_t (B, n_pad, n_pad) f32 (rot90∘bilinear-rotation, transposed, zero-padded).
    Returns (adv_rot (B,C,n_pad), labels (B,Cy,n_pad))."""
    B, M, n_pad = lhs.shape
    t = _pick_rot_tile(n_pad, M, C, Cy, _vmem_budget_bytes())
    grid = (B, n_pad // t, n_pad // t)             # K innermost (reduction)
    return pl.pallas_call(
        partial(_rotate_threshold_kernel, C=C, Cy=Cy),
        out_shape=(jax.ShapeDtypeStruct((B, C, n_pad), jnp.float32),
                   jax.ShapeDtypeStruct((B, Cy, n_pad), jnp.float32)),
        grid=grid,
        in_specs=[pl.BlockSpec((1, M, t), lambda b, j, k: (b, 0, k)),
                  pl.BlockSpec((1, t, t), lambda b, j, k: (b, k, j))],
        out_specs=(pl.BlockSpec((1, C, t), lambda b, j, k: (b, 0, j)),
                   pl.BlockSpec((1, Cy, t), lambda b, j, k: (b, 0, j))),
        scratch_shapes=[pltpu.VMEM((M, t), jnp.float32)],
        compiler_params=pltpu.CompilerParams(
            dimension_semantics=("parallel", "parallel", "arbitrary"),
            vmem_limit_bytes=_vmem_budget_bytes()),
    )(lhs, rot_t)


# ======================= resampling / rotation matrix builders =======================

@lru_cache(maxsize=None)
def _bilinear_resize_matrix_np(n_out, n_in):
    # torch F.interpolate(mode='bilinear', align_corners=False) as a matrix
    i = np.arange(n_out, dtype=np.float64)
    s = np.clip((i + 0.5) * (n_in / n_out) - 0.5, 0.0, n_in - 1.0)
    lo = np.floor(s).astype(np.int64)
    hi = np.minimum(lo + 1, n_in - 1)
    w_hi = (s - lo).astype(np.float32)
    w_lo = (1.0 - w_hi).astype(np.float32)
    M = np.zeros((n_out, n_in), np.float32)
    np.add.at(M, (np.arange(n_out), lo), w_lo)
    np.add.at(M, (np.arange(n_out), hi), w_hi)
    return M


@lru_cache(maxsize=None)
def _nearest_resize_matrix_np(n_out, n_in):
    # torch F.interpolate default (mode='nearest') as a matrix
    i = np.arange(n_out)
    src = np.clip(np.floor(i * (n_in / n_out)).astype(np.int64), 0, n_in - 1)
    M = np.zeros((n_out, n_in), np.float32)
    M[np.arange(n_out), src] = 1.0
    return M


def _rotation_matrix_np(k90, angle_deg, H, W):
    # (H*W, H*W) matrix: rot90 by k90 (exact permutation), then bilinear rotation
    # by angle_deg about the image center with zero fill (~torchvision.rotate).
    n = H * W
    idx = np.arange(n).reshape(H, W)
    src = np.rot90(idx, int(k90)).reshape(-1)
    P = np.zeros((n, n), np.float32)
    P[np.arange(n), src] = 1.0

    theta = np.deg2rad(float(angle_deg))
    c, s = np.cos(theta), np.sin(theta)
    cy, cx = (H - 1) / 2.0, (W - 1) / 2.0
    ii, jj = np.meshgrid(np.arange(H), np.arange(W), indexing="ij")
    dy, dx = (ii - cy).reshape(-1), (jj - cx).reshape(-1)
    sx = c * dx + s * dy + cx
    sy = -s * dx + c * dy + cy
    out_lin = np.arange(n)
    y0, x0 = np.floor(sy).astype(np.int64), np.floor(sx).astype(np.int64)
    fy, fx = sy - y0, sx - x0
    R = np.zeros((n, n), np.float32)
    for oy, ox, wgt in ((y0, x0, (1 - fy) * (1 - fx)),
                        (y0, x0 + 1, (1 - fy) * fx),
                        (y0 + 1, x0, fy * (1 - fx)),
                        (y0 + 1, x0 + 1, fy * fx)):
        valid = (oy >= 0) & (oy < H) & (ox >= 0) & (ox < W)
        src_lin = np.clip(oy, 0, H - 1) * W + np.clip(ox, 0, W - 1)
        np.add.at(R, (out_lin, src_lin), (wgt * valid).astype(np.float32))
    # TODO(synk): composition order (rot90 then bilinear rotation) and the 'nearest'
    # floor convention are assumed from the PyTorch/torchvision defaults; validate.
    return (R @ P).astype(np.float32)


# ================================ ANTLoss forward ================================

def init_noise_params(channels, key):
    gh, gw = GRID_SIZE
    kd, ks, kg = jax.random.split(key, 3)
    delta = 0.1 * jax.random.normal(kd, (1, channels, gh, gw), jnp.float32)
    speckle = 0.1 * jax.random.normal(ks, (1, channels, gh, gw), jnp.float32)
    gamma = 0.1 * jax.random.normal(kg, (1, channels, gh, gw), jnp.float32)
    return delta, speckle, gamma


@jax.jit
def _ant_device(x, background, y, delta_g, speckle_g, gamma_g,
                up_h, up_w, rh, rwt, rot_t):
    B, C, H, W = x.shape
    _, Cy, Hy, Wy = y.shape

    # ---- noise fields: ONE coarse->fine upsample of all 3 grids + tanh (tiny, XLA)
    grids = jnp.concatenate([delta_g, speckle_g, gamma_g], axis=1)     # (1, 3C, gh, gw)
    up = jnp.einsum('hg,ncgv,wv->nchw', up_h, grids, up_w)             # (1, 3C, H, W)
    d_up, s_up, g_up = jnp.split(up, 3, axis=1)
    speckle = 1.0 + LAMBDA_SPECKLE * jnp.tanh(s_up)                    # (1, C, H, W)
    delta = LAMBDA_DELTA * jnp.tanh(d_up)
    gamma = 1.0 + LAMBDA_GAMMA * jnp.tanh(g_up)

    # ---- fused NoiseModel + interpolate(size=y) ∘ _rand_decrease_res (kernel 1)
    adv_rs = pallas_noise_resample(x, background, speckle, delta, gamma, rh, rwt)

    # ---- _rand_rotate for adv and y with the shared operator; threshold fused (kernel 2)
    n = Hy * Wy
    n_pad = rot_t.shape[1]
    M = C + Cy
    M_pad = ((M + 7) // 8) * 8                                         # fill f32 sublanes
    lhs = jnp.concatenate([adv_rs.reshape(B, C, n),
                           y.reshape(B, Cy, n).astype(jnp.float32)], axis=1)
    lhs = jnp.pad(lhs, ((0, 0), (0, M_pad - M), (0, n_pad - n)))
    adv_rot, y_lab = pallas_rotate_threshold(lhs, rot_t, C, Cy)

    # _crop_sample is identity for crop=(1,1)
    return (adv_rot[..., :n].reshape(B, C, Hy, Wy),
            y_lab[..., :n].reshape(B, Cy, Hy, Wy))


def ant_loss_forward(x, background, y, key, host_seed=0):
    """Returns (adv_sample, y_crop) mirroring ANTLoss.forward's returned tensors."""
    B, C, H, W = x.shape
    _, Cy, Hy, Wy = y.shape
    assert Hy == Wy, "rot90 keeps spatial shape only for square spatial dims"

    # ---- per-batch augmentation parameters on the HOST RNG (no device sync)
    rng = np.random.default_rng(host_seed)
    downs = rng.uniform(MAX_DECREASE_RES, 1.0, size=B)        # uniform(0.25, 1)
    rot_k = rng.integers(0, 4, size=B)                        # choice([0,1,2,3])
    rot_r = rng.uniform(-10.0, 10.0, size=B)                  # uniform(-10, 10)

    # ---- noise-model grid parameters (device, deterministic from key)
    delta_g, speckle_g, gamma_g = init_noise_params(C, key)

    # ---- noise-grid upsample matrices (static, cached)
    gh, gw = GRID_SIZE
    up_h = jnp.asarray(_bilinear_resize_matrix_np(H, gh))     # (H, gh)
    up_w = jnp.asarray(_bilinear_resize_matrix_np(W, gw))     # (W, gw)

    # ---- per-batch small resample operators (no kron): decrease_res ∘ bilinear_interp
    bil_h = _bilinear_resize_matrix_np(Hy, H)
    bil_w = _bilinear_resize_matrix_np(Wy, W)
    n = Hy * Wy
    n_pad = _pad128(n)
    rh_l, rwt_l, rot_l = [], [], []
    for b in range(B):
        hd = max(1, int(np.floor(Hy * downs[b])))
        wd = max(1, int(np.floor(Wy * downs[b])))
        dres_h = _nearest_resize_matrix_np(Hy, hd) @ _nearest_resize_matrix_np(hd, Hy)
        dres_w = _nearest_resize_matrix_np(Wy, wd) @ _nearest_resize_matrix_np(wd, Wy)
        rh_l.append(dres_h @ bil_h)                            # (Hy, H) shared across channels
        rwt_l.append((dres_w @ bil_w).T)                       # (W, Wy)
        r = np.zeros((n_pad, n_pad), np.float32)
        r[:n, :n] = _rotation_matrix_np(rot_k[b], rot_r[b], Hy, Wy).T
        rot_l.append(r)

    # bf16 upload for the resample MXU operands (adv path only); the rotation operand
    # stays f32 so the label-threshold path is not perturbed by bf16 rounding.
    rh = jnp.asarray(np.stack(rh_l), dtype=jnp.bfloat16)       # (B, Hy, H)
    rwt = jnp.asarray(np.stack(rwt_l), dtype=jnp.bfloat16)     # (B, W, Wy)
    rot_t = jnp.asarray(np.stack(rot_l), dtype=jnp.float32)    # (B, n_pad, n_pad)

    # TODO(synk): adversarial optimization loop (model pred / loss / GradScaler
    # backward, num_iters=3) not translated -- requires external model + autograd.
    return _ant_device(x, background, y, delta_g, speckle_g, gamma_g,
                       up_h, up_w, rh, rwt, rot_t)


# ===================================== main =====================================

if __name__ == "__main__":
    key = jax.random.PRNGKey(0)
    B, C, H, W = 2, 4, 16, 16
    kx, kb, ky, kn = jax.random.split(key, 4)
    x = jax.random.uniform(kx, (B, C, H, W), jnp.float32)
    background = jax.random.uniform(kb, (B, C, H, W), jnp.float32)
    y = jax.random.uniform(ky, (B, C, H, W), jnp.float32)

    adv_sample, y_crop = ant_loss_forward(x, background, y, kn, host_seed=0)
    jax.block_until_ready((adv_sample, y_crop))
    assert adv_sample.shape == (B, C, H, W) and y_crop.shape == (B, C, H, W)
    assert bool(jnp.all(jnp.isfinite(adv_sample)))
    assert bool(jnp.all((y_crop == 0.0) | (y_crop == 1.0)))
    print("KERNEL_OK")
</pallas_src>

<mosaic_0001>
module attributes {stable_mosaic.version = 11 : i64} {
  func.func @_noise_resample_kernel(%arg0: i32, %arg1: i32, %arg2: memref<1x1x16x16xf32, #tpu.memory_space<vmem>>, %arg3: memref<1x1x16x16xf32, #tpu.memory_space<vmem>>, %arg4: memref<1x1x16x16xf32, #tpu.memory_space<vmem>>, %arg5: memref<1x1x16x16xf32, #tpu.memory_space<vmem>>, %arg6: memref<1x1x16x16xf32, #tpu.memory_space<vmem>>, %arg7: memref<1x16x16xbf16, #tpu.memory_space<vmem>>, %arg8: memref<1x16x16xbf16, #tpu.memory_space<vmem>>, %arg9: memref<1x1x16x16xf32, #tpu.memory_space<vmem>>) attributes {dimension_semantics = [#tpu.dimension_semantics<parallel>, #tpu.dimension_semantics<parallel>], iteration_bounds = array<i64: 2, 4>, scalar_prefetch = 0 : i64, scratch_operands = 0 : i64, tpu.core_type = #tpu.core_type<tc>, window_params = [{transform_indices = @transform_0, window_bounds = array<i64: 1, 1, 16, 16>}, {transform_indices = @transform_1, window_bounds = array<i64: 1, 1, 16, 16>}, {transform_indices = @transform_2, window_bounds = array<i64: 1, 1, 16, 16>}, {transform_indices = @transform_3, window_bounds = array<i64: 1, 1, 16, 16>}, {transform_indices = @transform_4, window_bounds = array<i64: 1, 1, 16, 16>}, {transform_indices = @transform_5, window_bounds = array<i64: 1, 16, 16>}, {transform_indices = @transform_6, window_bounds = array<i64: 1, 16, 16>}, {transform_indices = @transform_7, window_bounds = array<i64: 1, 1, 16, 16>}]} {
    %c0 = arith.constant 0 : index
    %c0_0 = arith.constant 0 : index
    %c0_1 = arith.constant 0 : index
    %c0_2 = arith.constant 0 : index
    %0 = vector.load %arg2[%c0, %c0_0, %c0_1, %c0_2] : memref<1x1x16x16xf32, #tpu.memory_space<vmem>>, vector<1x1x16x16xf32>
    %1 = vector.shape_cast %0 : vector<1x1x16x16xf32> to vector<16x16xf32>
    %c0_3 = arith.constant 0 : index
    %c0_4 = arith.constant 0 : index
    %c0_5 = arith.constant 0 : index
    %c0_6 = arith.constant 0 : index
    %2 = vector.load %arg3[%c0_3, %c0_4, %c0_5, %c0_6] : memref<1x1x16x16xf32, #tpu.memory_space<vmem>>, vector<1x1x16x16xf32>
    %3 = vector.shape_cast %2 : vector<1x1x16x16xf32> to vector<16x16xf32>
    %c0_7 = arith.constant 0 : index
    %c0_8 = arith.constant 0 : index
    %c0_9 = arith.constant 0 : index
    %c0_10 = arith.constant 0 : index
    %4 = vector.load %arg4[%c0_7, %c0_8, %c0_9, %c0_10] : memref<1x1x16x16xf32, #tpu.memory_space<vmem>>, vector<1x1x16x16xf32>
    %5 = vector.shape_cast %4 : vector<1x1x16x16xf32> to vector<16x16xf32>
    %c0_11 = arith.constant 0 : index
    %c0_12 = arith.constant 0 : index
    %c0_13 = arith.constant 0 : index
    %c0_14 = arith.constant 0 : index
    %6 = vector.load %arg5[%c0_11, %c0_12, %c0_13, %c0_14] : memref<1x1x16x16xf32, #tpu.memory_space<vmem>>, vector<1x1x16x16xf32>
    %7 = vector.shape_cast %6 : vector<1x1x16x16xf32> to vector<16x16xf32>
    %c0_15 = arith.constant 0 : index
    %c0_16 = arith.constant 0 : index
    %c0_17 = arith.constant 0 : index
    %c0_18 = arith.constant 0 : index
    %8 = vector.load %arg6[%c0_15, %c0_16, %c0_17, %c0_18] : memref<1x1x16x16xf32, #tpu.memory_space<vmem>>, vector<1x1x16x16xf32>
    %9 = vector.shape_cast %8 : vector<1x1x16x16xf32> to vector<16x16xf32>
    %cst = arith.constant 1.000000e-03 : f32
    %10 = vector.broadcast %cst : f32 to vector<16x16xf32>
    %11 = arith.mulf %10, %3 : vector<16x16xf32>
    %12 = arith.addf %1, %11 : vector<16x16xf32>
    %13 = arith.mulf %12, %5 : vector<16x16xf32>
    %14 = arith.addf %13, %7 : vector<16x16xf32>
    %cst_19 = arith.constant 0.000000e+00 : f32
    %cst_20 = arith.constant 1.000000e+00 : f32
    %15 = vector.broadcast %cst_19 : f32 to vector<16x16xf32>
    %16 = arith.maximumf %15, %14 : vector<16x16xf32>
    %17 = vector.broadcast %cst_20 : f32 to vector<16x16xf32>
    %18 = arith.minimumf %17, %16 : vector<16x16xf32>
    %cst_21 = arith.constant 1.000000e-30 : f32
    %19 = vector.broadcast %cst_21 : f32 to vector<16x16xf32>
    %20 = arith.maximumf %18, %19 : vector<16x16xf32>
    %21 = math.log %20 : vector<16x16xf32>
    %22 = arith.mulf %9, %21 : vector<16x16xf32>
    %23 = math.exp %22 : vector<16x16xf32>
    %cst_22 = arith.constant 0.000000e+00 : f32
    %24 = vector.broadcast %cst_22 : f32 to vector<16x16xf32>
    %25 = arith.cmpf ogt, %18, %24 : vector<16x16xf32>
    %cst_23 = arith.constant 0.000000e+00 : f32
    %26 = vector.broadcast %cst_23 : f32 to vector<16x16xf32>
    %27 = arith.select %25, %23, %26 : vector<16x16xi1>, vector<16x16xf32>
    %28 = arith.truncf %27 : vector<16x16xf32> to vector<16x16xbf16>
    %c0_24 = arith.constant 0 : index
    %c0_25 = arith.constant 0 : index
    %c0_26 = arith.constant 0 : index
    %29 = vector.load %arg7[%c0_24, %c0_25, %c0_26] : memref<1x16x16xbf16, #tpu.memory_space<vmem>>, vector<1x16x16xbf16>
    %30 = vector.shape_cast %29 : vector<1x16x16xbf16> to vector<16x16xbf16>
    %c0_27 = arith.constant 0 : index
    %c0_28 = arith.constant 0 : index
    %c0_29 = arith.constant 0 : index
    %31 = vector.load %arg8[%c0_27, %c0_28, %c0_29] : memref<1x16x16xbf16, #tpu.memory_space<vmem>>, vector<1x16x16xbf16>
    %32 = vector.shape_cast %31 : vector<1x16x16xbf16> to vector<16x16xbf16>
    %cst_30 = arith.constant dense<0.000000e+00> : vector<16x16xf32>
    %33 = tpu.matmul %28, %32, %cst_30 {dimension_numbers = #tpu.dot_dimension_numbers<[1], [0], [0], [1], [0, 0, 1, 1], [], []>} : vector<16x16xbf16>, vector<16x16xbf16>, vector<16x16xf32> -> vector<16x16xf32>
    %34 = arith.truncf %33 : vector<16x16xf32> to vector<16x16xbf16>
    %cst_31 = arith.constant dense<0.000000e+00> : vector<16x16xf32>
    %35 = tpu.matmul %30, %34, %cst_31 {dimension_numbers = #tpu.dot_dimension_numbers<[1], [0], [0], [1], [0, 0, 1, 1], [], []>} : vector<16x16xbf16>, vector<16x16xbf16>, vector<16x16xf32> -> vector<16x16xf32>
    %c0_32 = arith.constant 0 : index
    %c0_33 = arith.constant 0 : index
    %c0_34 = arith.constant 0 : index
    %c0_35 = arith.constant 0 : index
    %36 = vector.load %arg9[%c0_32, %c0_33, %c0_34, %c0_35] : memref<1x1x16x16xf32, #tpu.memory_space<vmem>>, vector<1x1x16x16xf32>
    %37 = vector.shape_cast %36 : vector<1x1x16x16xf32> to vector<16x16xf32>
    %38 = vector.shape_cast %35 : vector<16x16xf32> to vector<1x1x16x16xf32>
    tpu.vector_store %arg9[%c0_32, %c0_33, %c0_34, %c0_35], %38 {strides = array<i32>} : memref<1x1x16x16xf32, #tpu.memory_space<vmem>>, vector<1x1x16x16xf32>,
    return
  }
  func.func @transform_0(%arg0: i32, %arg1: i32) -> (i32, i32, i32, i32) {
    %c0_i32 = arith.constant 0 : i32
    %c0_i32_0 = arith.constant 0 : i32
    %c0_i32_1 = arith.constant 0 : i32
    return %arg0, %arg1, %c0_i32, %c0_i32_0 : i32, i32, i32, i32
  }
  func.func @transform_1(%arg0: i32, %arg1: i32) -> (i32, i32, i32, i32) {
    %c0_i32 = arith.constant 0 : i32
    %c0_i32_0 = arith.constant 0 : i32
    %c0_i32_1 = arith.constant 0 : i32
    return %arg0, %arg1, %c0_i32, %c0_i32_0 : i32, i32, i32, i32
  }
  func.func @transform_2(%arg0: i32, %arg1: i32) -> (i32, i32, i32, i32) {
    %c0_i32 = arith.constant 0 : i32
    %c0_i32_0 = arith.constant 0 : i32
    %c0_i32_1 = arith.constant 0 : i32
    %c0_i32_2 = arith.constant 0 : i32
    return %c0_i32, %arg1, %c0_i32_0, %c0_i32_1 : i32, i32, i32, i32
  }
  func.func @transform_3(%arg0: i32, %arg1: i32) -> (i32, i32, i32, i32) {
    %c0_i32 = arith.constant 0 : i32
    %c0_i32_0 = arith.constant 0 : i32
    %c0_i32_1 = arith.constant 0 : i32
    %c0_i32_2 = arith.constant 0 : i32
    return %c0_i32, %arg1, %c0_i32_0, %c0_i32_1 : i32, i32, i32, i32
  }
  func.func @transform_4(%arg0: i32, %arg1: i32) -> (i32, i32, i32, i32) {
    %c0_i32 = arith.constant 0 : i32
    %c0_i32_0 = arith.constant 0 : i32
    %c0_i32_1 = arith.constant 0 : i32
    %c0_i32_2 = arith.constant 0 : i32
    return %c0_i32, %arg1, %c0_i32_0, %c0_i32_1 : i32, i32, i32, i32
  }
  func.func @transform_5(%arg0: i32, %arg1: i32) -> (i32, i32, i32) {
    %c0_i32 = arith.constant 0 : i32
    %c0_i32_0 = arith.constant 0 : i32
    %c0_i32_1 = arith.constant 0 : i32
    return %arg0, %c0_i32, %c0_i32_0 : i32, i32, i32
  }
  func.func @transform_6(%arg0: i32, %arg1: i32) -> (i32, i32, i32) {
    %c0_i32 = arith.constant 0 : i32
    %c0_i32_0 = arith.constant 0 : i32
    %c0_i32_1 = arith.constant 0 : i32
    return %arg0, %c0_i32, %c0_i32_0 : i32, i32, i32
  }
  func.func @transform_7(%arg0: i32, %arg1: i32) -> (i32, i32, i32, i32) {
    %c0_i32 = arith.constant 0 : i32
    %c0_i32_0 = arith.constant 0 : i32
    %c0_i32_1 = arith.constant 0 : i32
    return %arg0, %arg1, %c0_i32, %c0_i32_0 : i32, i32, i32, i32
  }
}

module attributes {stable_mosaic.version = 11 : i64} {
  func.func @_rotate_threshold_kernel(%arg0: i32, %arg1: i32, %arg2: i32, %arg3: memref<1x8x256xf32, #tpu.memory_space<vmem>>, %arg4: memref<1x256x256xf32, #tpu.memory_space<vmem>>, %arg5: memref<1x4x256xf32, #tpu.memory_space<vmem>>, %arg6: memref<1x4x256xf32, #tpu.memory_space<vmem>>, %arg7: memref<8x256xf32, #tpu.memory_space<vmem>>) attributes {dimension_semantics = [#tpu.dimension_semantics<parallel>, #tpu.dimension_semantics<parallel>, #tpu.dimension_semantics<arbitrary>], iteration_bounds = array<i64: 2, 1, 1>, scalar_prefetch = 0 : i64, scratch_operands = 1 : i64, tpu.core_type = #tpu.core_type<tc>, window_params = [{transform_indices = @transform_0, window_bounds = array<i64: 1, 8, 256>}, {transform_indices = @transform_1, window_bounds = array<i64: 1, 256, 256>}, {transform_indices = @transform_2, window_bounds = array<i64: 1, 4, 256>}, {transform_indices = @transform_3, window_bounds = array<i64: 1, 4, 256>}]} {
    %c0_i32 = arith.constant 0 : i32
    %0 = arith.cmpi eq, %arg2, %c0_i32 : i32
    %1 = arith.extui %0 : i1 to i32
    %c0_i32_0 = arith.constant 0 : i32
    %2 = arith.cmpi ne, %1, %c0_i32_0 : i32
    scf.if %2 {
      %cst_12 = arith.constant 0.000000e+00 : f32
      %14 = vector.broadcast %cst_12 : f32 to vector<8x256xf32>
      %c0_13 = arith.constant 0 : index
      %c0_14 = arith.constant 0 : index
      %15 = vector.load %arg7[%c0_13, %c0_14] : memref<8x256xf32, #tpu.memory_space<vmem>>, vector<8x256xf32>
      tpu.vector_store %arg7[%c0_13, %c0_14], %14 {strides = array<i32>} : memref<8x256xf32, #tpu.memory_space<vmem>>, vector<8x256xf32>,
    } else {
    }
    %c0 = arith.constant 0 : index
    %c0_1 = arith.constant 0 : index
    %3 = vector.load %arg7[%c0, %c0_1] : memref<8x256xf32, #tpu.memory_space<vmem>>, vector<8x256xf32>
    %c0_2 = arith.constant 0 : index
    %c0_3 = arith.constant 0 : index
    %c0_4 = arith.constant 0 : index
    %4 = vector.load %arg3[%c0_2, %c0_3, %c0_4] : memref<1x8x256xf32, #tpu.memory_space<vmem>>, vector<1x8x256xf32>
    %5 = vector.shape_cast %4 : vector<1x8x256xf32> to vector<8x256xf32>
    %c0_5 = arith.constant 0 : index
    %c0_6 = arith.constant 0 : index
    %c0_7 = arith.constant 0 : index
    %6 = vector.load %arg4[%c0_5, %c0_6, %c0_7] : memref<1x256x256xf32, #tpu.memory_space<vmem>>, vector<1x256x256xf32>
    %7 = vector.shape_cast %6 : vector<1x256x256xf32> to vector<256x256xf32>
    %cst = arith.constant dense<0.000000e+00> : vector<8x256xf32>
    %8 = tpu.matmul %5, %7, %cst {dimension_numbers = #tpu.dot_dimension_numbers<[1], [0], [0], [1], [0, 0, 1, 1], [], []>} : vector<8x256xf32>, vector<256x256xf32>, vector<8x256xf32> -> vector<8x256xf32>
    %9 = arith.addf %3, %8 : vector<8x256xf32>
    %c0_8 = arith.constant 0 : index
    %c0_9 = arith.constant 0 : index
    %10 = vector.load %arg7[%c0_8, %c0_9] : memref<8x256xf32, #tpu.memory_space<vmem>>, vector<8x256xf32>
    tpu.vector_store %arg7[%c0_8, %c0_9], %9 {strides = array<i32>} : memref<8x256xf32, #tpu.memory_space<vmem>>, vector<8x256xf32>,
    %c0_i32_10 = arith.constant 0 : i32
    %11 = arith.cmpi eq, %arg2, %c0_i32_10 : i32
    %12 = arith.extui %11 : i1 to i32
    %c0_i32_11 = arith.constant 0 : i32
    %13 = arith.cmpi ne, %12, %c0_i32_11 : i32
    scf.if %13 {
      %c0_12 = arith.constant 0 : index
      %c0_13 = arith.constant 0 : index
      %14 = vector.load %arg7[%c0_12, %c0_13] : memref<8x256xf32, #tpu.memory_space<vmem>>, vector<8x256xf32>
      %15 = vector.extract_strided_slice %14 {offsets = [0, 0], sizes = [4, 256], strides = [1, 1]} : vector<8x256xf32> to vector<4x256xf32>
      %c0_14 = arith.constant 0 : index
      %c0_15 = arith.constant 0 : index
      %c0_16 = arith.constant 0 : index
      %16 = vector.load %arg5[%c0_14, %c0_15, %c0_16] : memref<1x4x256xf32, #tpu.memory_space<vmem>>, vector<1x4x256xf32>
      %17 = vector.shape_cast %16 : vector<1x4x256xf32> to vector<4x256xf32>
      %18 = vector.shape_cast %15 : vector<4x256xf32> to vector<1x4x256xf32>
      tpu.vector_store %arg5[%c0_14, %c0_15, %c0_16], %18 {strides = array<i32>} : memref<1x4x256xf32, #tpu.memory_space<vmem>>, vector<1x4x256xf32>,
      %19 = vector.extract_strided_slice %14 {offsets = [4, 0], sizes = [4, 256], strides = [1, 1]} : vector<8x256xf32> to vector<4x256xf32>
      %cst_17 = arith.constant 1.000000e-01 : f32
      %20 = vector.broadcast %cst_17 : f32 to vector<4x256xf32>
      %21 = arith.cmpf oge, %19, %20 : vector<4x256xf32>
      %cst_18 = arith.constant 1.000000e+00 : f32
      %cst_19 = arith.constant 0.000000e+00 : f32
      %22 = vector.broadcast %cst_18 : f32 to vector<4x256xf32>
      %23 = vector.broadcast %cst_19 : f32 to vector<4x256xf32>
      %24 = arith.select %21, %22, %23 : vector<4x256xi1>, vector<4x256xf32>
      %c0_20 = arith.constant 0 : index
      %c0_21 = arith.constant 0 : index
      %c0_22 = arith.constant 0 : index
      %25 = vector.load %arg6[%c0_20, %c0_21, %c0_22] : memref<1x4x256xf32, #tpu.memory_space<vmem>>, vector<1x4x256xf32>
      %26 = vector.shape_cast %25 : vector<1x4x256xf32> to vector<4x256xf32>
      %27 = vector.shape_cast %24 : vector<4x256xf32> to vector<1x4x256xf32>
      tpu.vector_store %arg6[%c0_20, %c0_21, %c0_22], %27 {strides = array<i32>} : memref<1x4x256xf32, #tpu.memory_space<vmem>>, vector<1x4x256xf32>,
    } else {
    }
    return
  }
  func.func @transform_0(%arg0: i32, %arg1: i32, %arg2: i32) -> (i32, i32, i32) {
    %c0_i32 = arith.constant 0 : i32
    %c0_i32_0 = arith.constant 0 : i32
    return %arg0, %c0_i32, %arg2 : i32, i32, i32
  }
  func.func @transform_1(%arg0: i32, %arg1: i32, %arg2: i32) -> (i32, i32, i32) {
    %c0_i32 = arith.constant 0 : i32
    return %arg0, %arg2, %arg1 : i32, i32, i32
  }
  func.func @transform_2(%arg0: i32, %arg1: i32, %arg2: i32) -> (i32, i32, i32) {
    %c0_i32 = arith.constant 0 : i32
    %c0_i32_0 = arith.constant 0 : i32
    return %arg0, %c0_i32, %arg1 : i32, i32, i32
  }
  func.func @transform_3(%arg0: i32, %arg1: i32, %arg2: i32) -> (i32, i32, i32) {
    %c0_i32 = arith.constant 0 : i32
    %c0_i32_0 = arith.constant 0 : i32
    return %arg0, %c0_i32, %arg1 : i32, i32, i32
  }
}

</mosaic_0001>

<bundles_post_ra>
// kernel: _ant_device.2
= control target key start
LH: loop header
LB: loop body
LE: loop exit
PB: predicated region body
PF: predicated region fallthrough
CT: control target
= control target key end

     0   :  { %s1532_s0 = inlined_call_operand.hbm [shape: f32[2,4,16,16], index: 0, kind: input, shape index: {}]   ;;  %s1533_s1 = inlined_call_operand.vmem [shape: f32[2,4,16,16], index: 1, kind: input, shape index: {}]   ;;  %s1534_s2 = inlined_call_operand.vmem [shape: f32[1,4,16,16], index: 2, kind: input, shape index: {}]   ;;  %s1535_s3 = inlined_call_operand.vmem [shape: f32[1,4,16,16], index: 3, kind: input, shape index: {}]   ;;  %s1536_s4 = inlined_call_operand.vmem [shape: f32[1,4,16,16], index: 4, kind: input, shape index: {}]   ;;  %s1537_s5 = inlined_call_operand.hbm [shape: bf16[2,16,16], index: 5, kind: input, shape index: {}]   ;;  %s1538_s6 = inlined_call_operand.hbm [shape: bf16[2,16,16], index: 6, kind: input, shape index: {}]   ;;  %s1539_s7 = inlined_call_operand.vmem [shape: f32[2,4,16,16], index: 7, kind: output, shape index: {}]  }
   0x1   :  { %1554 = sst [smem:[#allocation16_spill]] %s1533_s1 }
   0x2   :  { %1555 = sst [smem:[#allocation17_spill]] %s1534_s2 }
   0x3   :  { %1556 = sst [smem:[#allocation18_spill]] %s1535_s3 }
   0x4   :  { %1557 = sst [smem:[#allocation19_spill]] %s1536_s4 }
   0x5   :  { %1558 = sst [smem:[#allocation20_spill]] %s1537_s5 }
   0x6   :  { %1559 = sst [smem:[#allocation21_spill]] %s1538_s6 }
   0x7   :  { %1560 = sst [smem:[#allocation22_spill]] %s1539_s7 }
   0x8   :  { %12 = vsyncpa [#allocation3], 0 }
   0x9   :  { %14 = vsyncpa [#allocation3 + $0x1], 0 }
   0xa   :  { %15 = vsyncpa [#allocation5], 0 }
   0xb   :  { %17 = vsyncpa [#allocation5 + $0x1], 0  ;;  %s1251_s24 = smov 0   ;;  %s1253_s25 = smov 0  }
   0xc   :  { %s1255_s26 = smov 0   ;;  %s1257_s27 = smov 0  }
   0xd   :  { %s1259_s28 = smov 0   ;;  %s1261_s29 = smov 0  }
   0xe   :  { %s1263_s30 = smov 0   ;;  %s1265_s8 = smov 0  }
   0xf   :  { %s1267_s9 = smov 0   ;;  %s1269_s10 = smov 0  }
  0x10   :  { %s1271_s11 = smov 0  }
  0x11 LB: > { %1561 = sst [smem:[#allocation9_spill]] %s1164_s25  ;;  %s1540_s12 = sadd.s32 4294967295, %s1200_s11   ;;  %s1200_s11 = sphi %s1271_s11, %s23_s11   ;;  %s1196_s10 = sphi %s1269_s10, %s1603_s10   ;;  %s1192_s9 = sphi %s1267_s9, %s1596_s9   ;;  %s1188_s8 = sphi %s1265_s8, %s1602_s8   ;;  %s1184_s30 = sphi %s1263_s30, %s1595_s30   ;;  %s1180_s29 = sphi %s1261_s29, %s1601_s29   ;;  %s1176_s28 = sphi %s1259_s28, %s1600_s28   ;;  %s1172_s27 = sphi %s1257_s27, %s1599_s27   ;;  %s1168_s26 = sphi %s1255_s26, %s1598_s26   ;;  %s1164_s25 = sphi %s1253_s25, %s1597_s25   ;;  %s1160_s24 = sphi %s1251_s24, %s1594_s24  }
  0x12   : > { %1562 = sst [smem:[#allocation10_spill]] %s1184_s30  ;;  %p52_p0 = scmp.eq.s32.totalorder %s1200_s11, 0 }
  0x13   : > { %1563 = sst [smem:[#allocation11_spill]] %s1188_s8  ;;  %p1309_p1 = scmp.eq.s32.totalorder %s1540_s12, 0 }
  0x14   : > { %1564 = sst [smem:[#allocation12_spill]] %s1192_s9  ;;  %p183_p2 = scmp.ne.s32.totalorder %s1168_s26, %s1164_s25 }
  0x15   : > { %p189_p3 = scmp.ne.s32.totalorder %s1164_s25, %s1160_s24  ;;  %p917_p5 = scmp.lt.s32.totalorder %s1200_s11, 8 }
  0x16   : > { %p185_p4 = por %p183_p2, %p52_p0  ;;  %s326_s17 = sand.u32 1, %s1200_s11  }
  0x17   : > { %p1322_p6 = por %p189_p3, %p1309_p1  ;;  %s328_s18 = sand.u32 1, %s1168_s26  }
  0x18   : > { %s1328_s19 = sshll.u32 %s328_s18, 3  ;;  %s880_s20 = sshll.u32 %s1196_s10, 7 }
  0x19   : > { %s1566_s16 = scalar_select %p1322_p6, 1, 0 }
  0x1a   : > { %s1568_s5 = sld [smem:[#allocation20_spill]]  ;;  %s330_s12 = scalar_lea.vmem [#allocation4], %s1328_s19 }
  0x1b   : > { %1567 = sst [smem:[#allocation13_spill]] %s1566_s16  ;;  %s337_s24 = sshll.u32 %s330_s12, 4  ;;  %s338_s24 = int_to_ptr.vmem [resolvable:$true] %s337_s24 }
  0x1c   : > { %p1337_p7 = pnand %p917_p5, %p185_p4  ;;  %s1341_s13 = scalar_lea.sflag [#allocation5], %s326_s17 }
  0x1d   : > { %s1035_s18 = scalar_lea.vmem %s338_s24, 128  ;;  %s1202_s21 = smov [#allocation4]  }
  0x1e   : > { %p1552_p8 = pneg %p1337_p7  ;;  %p1036_p9 = scmp.ne.s32.totalorder %s338_s24, %s1035_s18 }
  0x1f   : > { %s1040_s12 = sshll.u32 %s1202_s21, 4  ;;  %s1041_s12 = int_to_ptr.vmem [resolvable:$false] %s1040_s12 }
  0x20   : > { %s336_s23 = scalar_lea.hbm %s1568_s5, %s880_s20  ;;  %p1038_p10 = pnand %p1036_p9, %p1552_p8 }
  0x21   : > { %s1042_s22 = scalar_lea.vmem %s1041_s12, 256  ;;  %p1043_p12 = scmp.lt.s32.totalorder %s338_s24, %s1041_s12 }
  0x22   : > { %p1039_p11 = pneg %p1038_p10  ;;  %p1044_p13 = scmp.lt.s32.totalorder %s1042_s22, %s1035_s18 }
  0x24   : > { %p1045_p2 = por %p1044_p13, %p1043_p12 }
  0x26   : > { %p1046_p3 = pnand %p1045_p2, %p1039_p11 }
  0x28   : > { %1049 = shalt.err (!%p1046_p3)
}
  0x29   : > { %s1541_s5 = smov 64   ;;  %s1542_s17 = smov 4  }
  0x2a   : > { %913 = dma.hbm_to_vmem [thread:$0]  (!%p1337_p7), %s336_s23, 128, %s338_s24, %s1341_s13, %s1541_s5, %s1541_s5, %s1542_s17  }
  0x2b   : > { %s1570_s6 = sld [smem:[#allocation21_spill]]  ;;  %s351_s22 = scalar_lea.vmem [#allocation6], %s1328_s19 }
  0x2c   : > { %s358_s7 = sshll.u32 %s351_s22, 4  ;;  %p858_p4 = scmp.ge.s32.totalorder %s1200_s11, 1  ;;  %s1361_s7 = int_to_ptr.vmem [resolvable:$true] %s358_s7 }
  0x2d   : > { %p366_p9 = scmp.lt.s32.totalorder %s1200_s11, 9  ;;  %s32_s23 = sadd.s32 1, %s1192_s9 }
  0x2e   : > { %p33_p11 = scmp.ge.s32.totalorder %s32_s23, 4  ;;  %s44_s24 = sadd.s32 1, %s1180_s29 }
  0x2f   : > { %p1364_p10 = pnand %p858_p4, %p366_p9  ;;  %p51_p12 = scmp.ne.s32.totalorder %s1180_s29, %s1176_s28 }
  0x30   : > { %p57_p13 = scmp.ne.s32.totalorder %s1176_s28, %s1172_s27  ;;  %s1605_s23 = smov (%p33_p11, %s32_s23), 0 }
  0x31   : > { %s1357_s12 = scalar_lea.hbm %s1570_s6, %s880_s20  ;;  %1572 = sst [smem:[#allocation14_spill]] %s1605_s23 }
  0x32   : > { %s1573_s19 = sadd.s32 1, %s1196_s10  ;;  %s40_s20 = ssub.s32 %s1192_s9, %s1605_s23 }
  0x33   : > { %s1607_s19 = smov (!%p33_p11, %s1573_s19), %s1196_s10  ;;  %p1383_p2 = por %p52_p0, %p51_p12 }
  0x34   : > { %p37_p3 = scmp.ge.s32.totalorder %s1607_s19, 2  ;;  %p1389_p4 = por %p1309_p1, %p57_p13 }
  0x35   : > { %s267_s27 = sand.u32 1, %s1180_s29   ;;  %s849_s22 = sshll.u32 %s1192_s9, 1 }
  0x36   : > { %s1575_s21 = scalar_select %p1389_p4, 1, 0 }
  0x37   : > { %s1609_s19 = smov (%p37_p3, %s1607_s19), 0  ;;  %s848_s5 = sshll.u32 %s267_s27, 4 }
  0x38   : > { %1576 = sst [smem:[#allocation15_spill]] %s1575_s21  ;;  %s39_s17 = ssub.s32 %s1196_s10, %s1609_s19 }
  0x39   : > { %s41_s6 = sor.u32 %s40_s20, %s39_s17  ;;  %p174_p0 = scmp.eq.s32.totalorder %s39_s17, 0 }
  0x3a   : > { %p42_p9 = scmp.eq.s32.totalorder %s41_s6, 0  ;;  %s850_s23 = sshll.u32 %s1196_s10, 3 }
  0x3b   : > { %s1577_s3 = sadd.s32 1, %s1168_s26  ;;  %s277_s1 = sadd.s32 %s850_s23, %s849_s22 }
  0x3c   : > { %s1403_s2 = scalar_select %p174_p0, %s1168_s26, %s1577_s3  }
  0x3d   : > { %s1406_s14 = scalar_select %p42_p9, %s1180_s29, %s44_s24  }
  0x3e   : > { %s271_s30 = scalar_lea.vmem [#allocation2], %s848_s5  ;;  %s851_s9 = sshll.u32 %s277_s1, 7 }
  0x3f   : > { %s280_s8 = sshll.u32 %s271_s30, 4  ;;  %s279_s21 = scalar_lea.hbm %s1532_s0, %s851_s9  ;;  %s281_s8 = int_to_ptr.vmem [resolvable:$true] %s280_s8 }
  0x40   : > { %p1415_p1 = pnand %p917_p5, %p1383_p2  ;;  %s268_s3 = scalar_lea.sflag [#allocation3], %s267_s27 }
  0x41   : > { %s1063_s6 = scalar_lea.vmem %s281_s8, 256  ;;  %s1205_s1 = smov [#allocation2]  }
  0x42   : > { %p1052_p11 = pneg %p1415_p1  ;;  %p1064_p12 = scmp.ne.s32.totalorder %s281_s8, %s1063_s6 }
  0x43   : > { %s1068_s5 = sshll.u32 %s1205_s1, 4  ;;  %s1069_s5 = int_to_ptr.vmem [resolvable:$false] %s1068_s5 }
  0x44   : > { %p1066_p13 = pnand %p1064_p12, %p1052_p11  ;;  %s1070_s30 = scalar_lea.vmem %s1069_s5, 512 }
  0x45   : > { %p1071_p0 = scmp.lt.s32.totalorder %s281_s8, %s1069_s5  ;;  %p1072_p9 = scmp.lt.s32.totalorder %s1070_s30, %s1063_s6 }
  0x46   : > { %p1067_p3 = pneg %p1066_p13 }
  0x47   : > { %p1073_p8 = por %p1072_p9, %p1071_p0 }
  0x49   : > { %p1074_p6 = pnand %p1073_p8, %p1067_p3 }
  0x4b   : > { %1077 = shalt.err (!%p1074_p6)
}
  0x4c   : > { %s1206_s25 = smov 128   ;;  %s1207_s9 = smov 8  }
  0x4d   : > { %910 = dma.hbm_to_vmem [thread:$0]  (!%p1415_p1), %s279_s21, 256, %s281_s8, %s268_s3, %s1206_s25, %s1206_s25, %s1207_s9  }
  0x4e   : > { %s1091_s16 = scalar_lea.vmem %s1361_s7, 128  ;;  %p1579_p2 = pneg %p1337_p7 }
  0x4f   : > { %p1092_p5 = scmp.ne.s32.totalorder %s1361_s7, %s1091_s16  ;;  %s1208_s23 = smov [#allocation6]  }
  0x50   : > { %s1096_s24 = sshll.u32 %s1208_s23, 4  ;;  %s1097_s24 = int_to_ptr.vmem [resolvable:$false] %s1096_s24 }
  0x51   : > { %p1094_p11 = pnand %p1092_p5, %p1579_p2  ;;  %s1098_s20 = scalar_lea.vmem %s1097_s24, 256 }
  0x52   : > { %p1099_p6 = scmp.lt.s32.totalorder %s1361_s7, %s1097_s24  ;;  %p1100_p8 = scmp.lt.s32.totalorder %s1098_s20, %s1091_s16 }
  0x53   : > { %p1095_p12 = pneg %p1094_p11 }
  0x54   : > { %p1101_p13 = por %p1100_p8, %p1099_p6 }
  0x56   : > { %p1102_p3 = pnand %p1101_p13, %p1095_p12 }
  0x58   : > { %1105 = shalt.err (!%p1102_p3)
}
  0x59   : > { %s1580_s18 = smov 4   ;;  %s1581_s27 = smov 64  }
  0x5a   : > { %916 = dma.hbm_to_vmem [thread:$0]  (!%p1337_p7), %s1357_s12, 128, %s1361_s7, %s1341_s13, %s1581_s27, %s1581_s27, %s1580_s18  }
  0x5b   : > { %370 = sbr.rel (%p1364_p10) target bundleno = 575 (0x23f), region = 48  ;;  %s372_s21 = sand.u32 (!%p1364_p10), 1, %s1176_s28  }
  0x5c   : > { %s1440_s22 = sshll.u32 (!%p1364_p10), %s372_s21, 4  ;;  %s373_s17 = scalar_lea.sflag (!%p1364_p10), [#allocation3], %s372_s21 }
  0x5d   : > { %s376_s3 = scalar_lea.vmem (!%p1364_p10), [#allocation2], %s1440_s22 }
  0x60   : > { %1151 = dma.done.wait (%p1389_p4), %s373_s17, 256  }
  0x61   : > { %1153 = vsyncadd (%p1389_p4), %s373_s17, 4294967040  ;;  %s1583_s15 = sadd.s32 4294967295, %s1200_s11   ;;  %s1584_s6 = sld [smem:[#allocation9_spill]] }
  0x62   : > { %s1585_s7 = sld [smem:[#allocation13_spill]]  ;;  %s381_s13 = sand.u32 1, %s1583_s15  }
  0x63   : > { %s382_s1 = scalar_lea.sflag [#allocation5], %s381_s13 }
  0x67   : > { %s383_s4 = sand.u32 1, %s1584_s6  }
  0x68   : > { %s1450_s12 = sshll.u32 %s383_s4, 3  ;;  %p1586_p7 = scmp.ne.s32.totalorder %s1585_s7, 0 }
  0x69   : > { %s385_s5 = scalar_lea.vmem [#allocation4], %s1450_s12 }
  0x6a   : > { %1155 = dma.done.wait (%p1586_p7), %s382_s1, 256  }
  0x6b   : > { %1157 = vsyncadd (%p1586_p7), %s382_s1, 4294967040  ;;  %s1587_s30 = sld [smem:[#allocation11_spill]]  ;;  %v1209_v0 = vmov 0.0   ;;  %vm1210_vm0 = vmmov 0   ;;  %s394_s20 = scalar_lea.vmem [#allocation6], %s1450_s12  ;;  %v497_v2 = vld [vmem:[%s376_s3] sm:$0xff] }
  0x6c   : > { %s1588_s25 = sld [smem:[#allocation10_spill]]  ;;  %889 = vmatprep.subr.bf16.mxu0 %v1209_v0  ;;  %891 = vmatprep.mubr.msk.bf16.mxu0 %vm1210_vm0, %v1209_v0  ;;  %v1012_v1 = vld [vmem:[%s394_s20] sm:$0xff]   ;;  %vm546_vm3 = vcmask 130048   ;;  %v1013_v44 = vld [vmem:[%s385_s5] sm:$0xff]  }
  0x6d   : > { %895 = vmatprep.subr.bf16.mxu1 %v1209_v0  ;;  %897 = vmatprep.mubr.msk.bf16.mxu1 %vm1210_vm0, %v1209_v0  ;;  %s1589_s21 = sld [smem:[#allocation16_spill]]  ;;  %v498_v5 = vld [vmem:[%s376_s3 + $0x8] sm:$0xff] }
  0x6e   : > { %s1590_s7 = sld [smem:[#allocation17_spill]]  ;;  %890 = vmatpush3.bf16.msra.mxu0 %v1012_v1 }
  0x6f   : > { %s1593_s27 = sld [smem:[#allocation22_spill]] }
  0x71   : > { %p463_p10 = scmp.lt.s32.totalorder %s1587_s30, 1 }
  0x72   : > { %p465_p4 = scmp.lt.s32.totalorder %s1588_s25, 3 }
  0x73   : > { %s1611_s30 = smov (!%p463_p10, %s1587_s30), 1 }
  0x74   : > { %s1613_s25 = smov (!%p465_p4, %s1588_s25), 3  ;;  %s863_s9 = sshll.u32 %s1611_s30, 3 }
  0x75   : > { %s862_s16 = sshll.u32 %s1613_s25, 1  ;;  %s1461_s23 = sshll.u32 %s1613_s25, 4 }
  0x76   : > { %s1463_s24 = sadd.s32 %s863_s9, %s862_s16  ;;  %s476_s13 = scalar_lea.vmem %s1590_s7, %s1461_s23 }
  0x77   : > { %s864_s18 = sshll.u32 %s1463_s24, 3  ;;  %s1591_s30 = sld [smem:[#allocation18_spill]]  ;;  %v501_v7 = vld [vmem:[%s476_s13] sm:$0xff]  ;;  %v502_v9 = vld [vmem:[%s476_s13 + $0x8] sm:$0xff] }
  0x78   : > { %s471_s17 = scalar_lea.vmem %s1589_s21, %s864_s18  ;;  %s1592_s9 = sld [smem:[#allocation19_spill]] }
  0x79   : > { %v499_v3 = vld [vmem:[%s471_s17] sm:$0xff]  ;;  %v500_v4 = vld [vmem:[%s471_s17 + $0x8] sm:$0xff]  ;;  %s495_s8 = scalar_lea.vmem %s1593_s27, %s864_s18 }
  0x7a   : > { %v507_v6 = vmul.f32 0.001, %v499_v3  ;;  %v508_v8 = vmul.f32 0.001, %v500_v4 }
  0x7c   : > { %v509_v10 = vadd.f32 %v507_v6, %v497_v2  ;;  %v510_v12 = vadd.f32 %v508_v8, %v498_v5 }
  0x7d   : > { %s481_s25 = scalar_lea.vmem %s1591_s30, %s1461_s23 }
  0x7e   : > { %v503_v11 = vld [vmem:[%s481_s25] sm:$0xff]  ;;  %v504_v13 = vld [vmem:[%s481_s25 + $0x8] sm:$0xff]  ;;  %v511_v14 = vmul.f32 %v509_v10, %v501_v7  ;;  %v512_v15 = vmul.f32 %v510_v12, %v502_v9  ;;  %s486_s16 = scalar_lea.vmem %s1592_s9, %s1461_s23 }
  0x7f   : > { %v505_v25 = vld [vmem:[%s486_s16] sm:$0xff]  ;;  %v506_v27 = vld [vmem:[%s486_s16 + $0x8] sm:$0xff] }
  0x80   : > { %v513_v16 = vadd.f32 %v511_v14, %v503_v11  ;;  %v514_v17 = vadd.f32 %v512_v15, %v504_v13 }
  0x82   : > { %v515_v18 = vmax.f32 %v513_v16, 0.0  ;;  %v516_v19 = vmax.f32 %v514_v17, 0.0 }
  0x84   : > { %v517_v20 = vmin.f32 %v515_v18, 1.0  ;;  %v518_v21 = vmin.f32 %v516_v19, 1.0 }
  0x86   : > { %v519_v22 = vmax.f32 %v517_v20, 1e-30  ;;  %v520_v23 = vmax.f32 %v518_v21, 1e-30  ;;  %vm531_vm1 = vcmp.gt.f32.partialorder %v517_v20, 0.0  ;;  %vm532_vm2 = vcmp.gt.f32.partialorder %v518_v21, 0.0 }
  0x88   : > { %1014 = vlog2.f32 %v519_v22 }
  0x89   : > { %1016 = vlog2.f32 %v520_v23 }
  0x95   : > { %v1015_v24 = vpop.eup %1014 }
  0x96   : > { %v1017_v26 = vpop.eup %1016  ;;  %v522_v28 = vmul.f32 0.6931472, %v1015_v24 }
  0x97   : > { %v524_v29 = vmul.f32 0.6931472, %v1017_v26 }
  0x98   : > { %v525_v30 = vmul.f32 %v522_v28, %v505_v25 }
  0x99   : > { %v526_v31 = vmul.f32 %v524_v29, %v506_v27 }
  0x9a   : > { %v527_v32 = vmul.f32 1.442695, %v525_v30 }
  0x9b   : > { %v529_v33 = vmul.f32 1.442695, %v526_v31 }
  0x9c   : > { %1018 = vpow2.f32 %v527_v32 }
  0x9d   : > { %1020 = vpow2.f32 %v529_v33 }
  0xa9   : > { %v1019_v34 = vpop.eup %1018 }
  0xaa   : > { %v1021_v35 = vpop.eup %1020  ;;  %v533_v36 = vsel %vm531_vm1, %v1019_v34, 0.0 }
  0xab   : > { %v534_v37 = vsel %vm532_vm2, %v1021_v35, 0.0 }
  0xac   : > { %v535_v38 = vpack.c.bf16 %v534_v37, %v533_v36 }
  0xae   : > { %892 = vmatmul.mubr.msk.bf16.vlgmr.msra.gmra.mxu0 %vm546_vm3, %v535_v38 }
 0x16e   : > { %v584_v39 = vpop.f32.mrf.mxu0 }
 0x170   : > { %v893_v40 = vpop.f32.mrf.mxu0 }
 0x172   : > { %v587_v41 = vpop.f32.mrf.mxu0 }
 0x173   : > { %v591_v42 = vpack.c.bf16 %v587_v41, %v584_v39 }
 0x174   : > { %v894_v43 = vpop.f32.mrf.mxu0 }
 0x175   : > { %896 = vmatpush3.bf16.msra.mxu1 %v591_v42 }
 0x178   : > { %898 = vmatmul.mubr.msk.bf16.vlgmr.msra.gmra.mxu1 %vm546_vm3, %v1013_v44 }
 0x238   : > { %v634_v45 = vpop.f32.mrf.mxu1 }
 0x239   : > { %641 = vst.msk [vmem:[%s495_s8] sm:$0xff] %vm546_vm3, %v634_v45 }
 0x23a   : > { %v899_v46 = vpop.f32.mrf.mxu1 }
 0x23c   : > { %v637_v47 = vpop.f32.mrf.mxu1 }
 0x23d   : > { %642 = vst.msk [vmem:[%s495_s8 + $0x8] sm:$0xff] %vm546_vm3, %v637_v47 }
 0x23e   : > { %v900_v48 = vpop.f32.mrf.mxu1 }
 0x23f PF: > { %s23_s11 = sadd.s32 1, %s1200_s11   ;;  %s1594_s24 = sld [smem:[#allocation9_spill]] }
 0x240   : > { %p20_p1 = scmp.ge.s32.totalorder %s23_s11, 10   ;;  %s1595_s30 = sld [smem:[#allocation12_spill]] }
 0x241   : > { %s1596_s9 = sld [smem:[#allocation14_spill]]  ;;  %s1597_s25 = smov %s1168_s26 }
 0x242   : > { %s1598_s26 = smov %s1403_s2  ;;  %s1599_s27 = smov %s1176_s28 }
 0x243   : > { %s1600_s28 = smov %s1180_s29  ;;  %s1601_s29 = smov %s1406_s14 }
 0x244   : > { %s1602_s8 = smov %s1196_s10  ;;  %s1603_s10 = smov %s1609_s19 }
 0x245   :  { %22 = sbr.rel (!%p20_p1) target bundleno = 17 (0x11), region = 124 }
 0x24a   :  { %672 = vsyncpa [#allocation3], 1 }
 0x24b   :  { %674 = vsyncpa [#allocation3 + $0x1], 1 }
 0x24c   :  { %675 = vsyncpa [#allocation5], 1 }
 0x24d   :  { %677 = vsyncpa [#allocation5 + $0x1], 1 }

// kernel: _ant_device.3
= control target key start
LH: loop header
LB: loop body
LE: loop exit
PB: predicated region body
PF: predicated region fallthrough
CT: control target
= control target key end

     0   :  { %s717_s12 = smov 0   ;;  %s719_s13 = smov 0   ;;  %s831_s0 = inlined_call_operand.vmem [shape: f32[2,8,256], index: 0, kind: input, shape index: {}]   ;;  %s832_s1 = inlined_call_operand.vmem [shape: f32[2,256,256], index: 1, kind: input, shape index: {}]   ;;  %s833_s2 = inlined_call_operand.vmem [shape: f32[2,4,256], index: 2, kind: output, shape index: {0}]   ;;  %s834_s3 = inlined_call_operand.vmem [shape: f32[2,4,256], index: 3, kind: output, shape index: {1}]  }
   0x1   :  { %s721_s14 = smov 0  }
   0x2 LB: > { %s33_s15 = sadd.s32 1, %s690_s13  ;;  %p632_p0 = scmp.ge.s32.totalorder %s694_s14, 1  ;;  %s694_s14 = sphi %s721_s14, %s14_s14   ;;  %s690_s13 = sphi %s719_s13, %s836_s13   ;;  %s686_s12 = sphi %s717_s12, %s835_s12  }
   0x3   : > { %p35_p1 = scmp.ge.s32.totalorder %s33_s15, 2  ;;  %p195_p2 = scmp.lt.s32.totalorder %s694_s14, 3 }
   0x5   : > { %s838_s15 = smov (%p35_p1, %s33_s15), 0  ;;  %p196_p3 = pnand %p632_p0, %p195_p2 }
   0x6   : > { %p251_p4 = scmp.lt.s32.totalorder (!%p196_p3), %s686_s12, 1 }
   0x7   : > { %199 = sbr.rel (%p196_p3) target bundleno = 280 (0x118), region = 28 }
   0xc   : > { %s840_s12 = smov (!%p251_p4, %s686_s12), 1 }
   0xd   : > { %s644_s16 = sshll.u32 %s840_s12, 9  ;;  %s643_s20 = sshll.u32 %s840_s12, 4 }
   0xe   : > { %s741_s19 = scalar_lea.vmem %s832_s1, %s644_s16  ;;  %s768_s23 = scalar_lea.vmem %s831_s0, %s643_s20 }
   0xf   : > { %v337_v0 = vld [vmem:[%s741_s19 + $0xf8] sm:$0xff]  ;;  %v336_v1 = vld [vmem:[%s741_s19 + $0xf0] sm:$0xff]  ;;  %v335_v2 = vld [vmem:[%s741_s19 + $0xe8] sm:$0xff]  ;;  %s645_s24 = sshll.u32 %s840_s12, 3 }
  0x10   : > { %370 = vmatprep.subr.mxu0 %v337_v0  ;;  %v334_v3 = vld [vmem:[%s741_s19 + $0xe0] sm:$0xff]  ;;  %v333_v4 = vld [vmem:[%s741_s19 + $0xd8] sm:$0xff]  ;;  %v332_v5 = vld [vmem:[%s741_s19 + $0xd0] sm:$0xff]  ;;  %s284_s27 = scalar_lea.vmem %s833_s2, %s645_s24  ;;  %s294_s30 = scalar_lea.vmem %s834_s3, %s645_s24 }
  0x11   : > { %371 = vmatpush1.msra.mxu0 %v336_v1  ;;  %v331_v6 = vld [vmem:[%s741_s19 + $0xc8] sm:$0xff]  ;;  %v330_v7 = vld [vmem:[%s741_s19 + $0xc0] sm:$0xff]  ;;  %v329_v8 = vld [vmem:[%s741_s19 + $0xb8] sm:$0xff] }
  0x12   : > { %372 = vmatprep.subr.mxu0 %v335_v2  ;;  %v328_v9 = vld [vmem:[%s741_s19 + $0xb0] sm:$0xff]  ;;  %v327_v10 = vld [vmem:[%s741_s19 + $0xa8] sm:$0xff]  ;;  %v326_v11 = vld [vmem:[%s741_s19 + $0xa0] sm:$0xff] }
  0x13   : > { %373 = vmatpush1.msra.mxu0 %v334_v3  ;;  %v325_v12 = vld [vmem:[%s741_s19 + $0x98] sm:$0xff]  ;;  %v324_v13 = vld [vmem:[%s741_s19 + $0x90] sm:$0xff]  ;;  %v323_v14 = vld [vmem:[%s741_s19 + $0x88] sm:$0xff] }
  0x14   : > { %374 = vmatprep.subr.mxu0 %v333_v4  ;;  %v322_v15 = vld [vmem:[%s741_s19 + $0x80] sm:$0xff]  ;;  %v321_v16 = vld [vmem:[%s741_s19 + $0x78] sm:$0xff]  ;;  %v320_v17 = vld [vmem:[%s741_s19 + $0x70] sm:$0xff] }
  0x15   : > { %375 = vmatpush1.msra.mxu0 %v332_v5  ;;  %v319_v18 = vld [vmem:[%s741_s19 + $0x68] sm:$0xff]  ;;  %v318_v19 = vld [vmem:[%s741_s19 + $0x60] sm:$0xff]  ;;  %v317_v20 = vld [vmem:[%s741_s19 + $0x58] sm:$0xff]  ;;  %v696_v5 = vmov 0.0  }
  0x16   : > { %376 = vmatprep.subr.mxu0 %v331_v6  ;;  %v316_v21 = vld [vmem:[%s741_s19 + $0x50] sm:$0xff]  ;;  %v315_v22 = vld [vmem:[%s741_s19 + $0x48] sm:$0xff]  ;;  %v314_v23 = vld [vmem:[%s741_s19 + $0x40] sm:$0xff] }
  0x17   : > { %377 = vmatpush1.msra.mxu0 %v330_v7  ;;  %v305_v24 = vld [vmem:[%s768_s23 + $0x8] sm:$0xff]  ;;  %v313_v25 = vld [vmem:[%s741_s19 + $0x38] sm:$0xff]  ;;  %v312_v26 = vld [vmem:[%s741_s19 + $0x30] sm:$0xff] }
  0x18   : > { %378 = vmatprep.subr.mxu0 %v329_v8  ;;  %434 = vmatprep.mubr.f32.mxu0 %v305_v24  ;;  %v311_v27 = vld [vmem:[%s741_s19 + $0x28] sm:$0xff]  ;;  %v310_v28 = vld [vmem:[%s741_s19 + $0x20] sm:$0xff]  ;;  %v309_v29 = vld [vmem:[%s741_s19 + $0x18] sm:$0xff] }
  0x19   : > { %379 = vmatpush1.msra.mxu0 %v328_v9  ;;  %v308_v30 = vld [vmem:[%s741_s19 + $0x10] sm:$0xff]  ;;  %v307_v31 = vld [vmem:[%s741_s19 + $0x8] sm:$0xff]  ;;  %v306_v32 = vld [vmem:[%s741_s19] sm:$0xff] }
  0x1a   : > { %380 = vmatprep.subr.mxu0 %v327_v10  ;;  %v369_v33 = vld [vmem:[%s741_s19 + $0x1f8] sm:$0xff]  ;;  %v368_v34 = vld [vmem:[%s741_s19 + $0x1f0] sm:$0xff]  ;;  %v367_v35 = vld [vmem:[%s741_s19 + $0x1e8] sm:$0xff] }
  0x1b   : > { %381 = vmatpush1.msra.mxu0 %v326_v11  ;;  %v366_v36 = vld [vmem:[%s741_s19 + $0x1e0] sm:$0xff]  ;;  %v365_v37 = vld [vmem:[%s741_s19 + $0x1d8] sm:$0xff]  ;;  %v364_v38 = vld [vmem:[%s741_s19 + $0x1d0] sm:$0xff] }
  0x1c   : > { %382 = vmatprep.subr.mxu0 %v325_v12  ;;  %v363_v39 = vld [vmem:[%s741_s19 + $0x1c8] sm:$0xff]  ;;  %v362_v40 = vld [vmem:[%s741_s19 + $0x1c0] sm:$0xff]  ;;  %v361_v41 = vld [vmem:[%s741_s19 + $0x1b8] sm:$0xff] }
  0x1d   : > { %383 = vmatpush1.msra.mxu0 %v324_v13  ;;  %v360_v42 = vld [vmem:[%s741_s19 + $0x1b0] sm:$0xff]  ;;  %v359_v43 = vld [vmem:[%s741_s19 + $0x1a8] sm:$0xff]  ;;  %v358_v44 = vld [vmem:[%s741_s19 + $0x1a0] sm:$0xff] }
  0x1e   : > { %384 = vmatprep.subr.mxu0 %v323_v14  ;;  %v357_v45 = vld [vmem:[%s741_s19 + $0x198] sm:$0xff]  ;;  %v356_v46 = vld [vmem:[%s741_s19 + $0x190] sm:$0xff]  ;;  %v355_v47 = vld [vmem:[%s741_s19 + $0x188] sm:$0xff] }
  0x1f   : > { %385 = vmatpush1.msra.mxu0 %v322_v15  ;;  %v354_v48 = vld [vmem:[%s741_s19 + $0x180] sm:$0xff]  ;;  %v353_v49 = vld [vmem:[%s741_s19 + $0x178] sm:$0xff]  ;;  %v352_v50 = vld [vmem:[%s741_s19 + $0x170] sm:$0xff] }
  0x20   : > { %386 = vmatprep.subr.mxu0 %v321_v16  ;;  %v351_v51 = vld [vmem:[%s741_s19 + $0x168] sm:$0xff]  ;;  %v350_v52 = vld [vmem:[%s741_s19 + $0x160] sm:$0xff]  ;;  %v349_v53 = vld [vmem:[%s741_s19 + $0x158] sm:$0xff] }
  0x21   : > { %387 = vmatpush1.msra.mxu0 %v320_v17  ;;  %v348_v54 = vld [vmem:[%s741_s19 + $0x150] sm:$0xff]  ;;  %v347_v55 = vld [vmem:[%s741_s19 + $0x148] sm:$0xff]  ;;  %v346_v56 = vld [vmem:[%s741_s19 + $0x140] sm:$0xff] }
  0x22   : > { %388 = vmatprep.subr.mxu0 %v319_v18  ;;  %v345_v57 = vld [vmem:[%s741_s19 + $0x138] sm:$0xff]  ;;  %v344_v58 = vld [vmem:[%s741_s19 + $0x130] sm:$0xff]  ;;  %v343_v59 = vld [vmem:[%s741_s19 + $0x128] sm:$0xff] }
  0x23   : > { %389 = vmatpush1.msra.mxu0 %v318_v19  ;;  %v342_v60 = vld [vmem:[%s741_s19 + $0x120] sm:$0xff]  ;;  %v341_v61 = vld [vmem:[%s741_s19 + $0x118] sm:$0xff]  ;;  %v340_v62 = vld [vmem:[%s741_s19 + $0x110] sm:$0xff] }
  0x24   : > { %390 = vmatprep.subr.mxu0 %v317_v20  ;;  %v339_v63 = vld [vmem:[%s741_s19 + $0x108] sm:$0xff]  ;;  %v338_v0 = vld [vmem:[%s741_s19 + $0x100] sm:$0xff] }
  0x25   : > { %391 = vmatpush1.msra.mxu0 %v316_v21  ;;  %v304_v1 = vld [vmem:[%s768_s23] sm:$0xff] }
  0x26   : > { %392 = vmatprep.subr.mxu0 %v315_v22 }
  0x27   : > { %393 = vmatpush1.msra.mxu0 %v314_v23 }
  0x28   : > { %394 = vmatprep.subr.mxu0 %v313_v25 }
  0x29   : > { %395 = vmatpush1.msra.mxu0 %v312_v26 }
  0x2a   : > { %396 = vmatprep.subr.mxu0 %v311_v27 }
  0x2b   : > { %397 = vmatpush1.msra.mxu0 %v310_v28 }
  0x2c   : > { %398 = vmatprep.subr.mxu0 %v309_v29 }
  0x2d   : > { %399 = vmatpush1.msra.mxu0 %v308_v30 }
  0x2e   : > { %400 = vmatprep.subr.mxu0 %v307_v31 }
  0x2f   : > { %401 = vmatpush1.msra.mxu0 %v306_v32 }
  0x30   : > { %402 = vmatprep.subr.mxu0 %v369_v33 }
  0x31   : > { %403 = vmatpush2.msra.mxu0 %v368_v34 }
  0x32   : > { %404 = vmatprep.subr.mxu0 %v367_v35 }
  0x33   : > { %405 = vmatpush2.msra.mxu0 %v366_v36 }
  0x34   : > { %406 = vmatprep.subr.mxu0 %v365_v37 }
  0x35   : > { %407 = vmatpush2.msra.mxu0 %v364_v38 }
  0x36   : > { %408 = vmatprep.subr.mxu0 %v363_v39 }
  0x37   : > { %409 = vmatpush2.msra.mxu0 %v362_v40 }
  0x38   : > { %410 = vmatprep.subr.mxu0 %v361_v41 }
  0x39   : > { %411 = vmatpush2.msra.mxu0 %v360_v42 }
  0x3a   : > { %412 = vmatprep.subr.mxu0 %v359_v43 }
  0x3b   : > { %413 = vmatpush2.msra.mxu0 %v358_v44 }
  0x3c   : > { %414 = vmatprep.subr.mxu0 %v357_v45 }
  0x3d   : > { %415 = vmatpush2.msra.mxu0 %v356_v46 }
  0x3e   : > { %416 = vmatprep.subr.mxu0 %v355_v47 }
  0x3f   : > { %417 = vmatpush2.msra.mxu0 %v354_v48 }
  0x40   : > { %418 = vmatprep.subr.mxu0 %v353_v49 }
  0x41   : > { %419 = vmatpush2.msra.mxu0 %v352_v50 }
  0x42   : > { %420 = vmatprep.subr.mxu0 %v351_v51 }
  0x43   : > { %421 = vmatpush2.msra.mxu0 %v350_v52 }
  0x44   : > { %422 = vmatprep.subr.mxu0 %v349_v53 }
  0x45   : > { %423 = vmatpush2.msra.mxu0 %v348_v54 }
  0x46   : > { %424 = vmatprep.subr.mxu0 %v347_v55 }
  0x47   : > { %425 = vmatpush2.msra.mxu0 %v346_v56 }
  0x48   : > { %426 = vmatprep.subr.mxu0 %v345_v57 }
  0x49   : > { %427 = vmatpush2.msra.mxu0 %v344_v58 }
  0x4a   : > { %428 = vmatprep.subr.mxu0 %v343_v59 }
  0x4b   : > { %429 = vmatpush2.msra.mxu0 %v342_v60 }
  0x4c   : > { %430 = vmatprep.subr.mxu0 %v341_v61 }
  0x4d   : > { %431 = vmatpush2.msra.mxu0 %v340_v62 }
  0x4e   : > { %432 = vmatprep.subr.mxu0 %v339_v63 }
  0x4f   : > { %433 = vmatpush2.msra.mxu0 %v338_v0 }
  0x50   : > { %435 = vmatmul.mubr.f32.vlgmr.msra.gmra.mxu0 %v304_v1 }
 0x110   : > { %v436_v2 = vpop.f32.mrf.mxu0 }
 0x111   : > { %vm455_vm0 = vcmp.ge.f32.partialorder %v436_v2, 0.1 }
 0x112   : > { %v438_v3 = vpop.f32.mrf.mxu0  ;;  %v457_v6 = vsel %vm455_vm0, 1.0, %v696_v5 }
 0x113   : > { %v452_v4 = vcombine.low %v436_v2, %v438_v3  ;;  %vm456_vm1 = vcmp.ge.f32.partialorder %v438_v3, 0.1 }
 0x114   : > { %v458_v7 = vsel %vm456_vm1, 1.0, %v696_v5 }
 0x115   : > { %454 = vst [vmem:[%s284_s27] sm:$0xff] %v452_v4  ;;  %v461_v8 = vcombine.high %v457_v6, %v458_v7 }
 0x117   : > { %463 = vst [vmem:[%s294_s30] sm:$0xff] %v461_v8 }
 0x118 PF: > { %s14_s14 = sadd.s32 1, %s694_s14   ;;  %s835_s12 = smov %s690_s13 }
 0x119   : > { %p11_p5 = scmp.ge.s32.totalorder %s14_s14, 4   ;;  %s836_s13 = smov %s838_s15 }
 0x11b   :  { %13 = sbr.rel (!%p11_p5) target bundleno = 2 (0x2), region = 81 }

</bundles_post_ra>
